<compile_context>
chip_gen: v7x
topology: tpu7x:2x2x1
jax: 0.10.0
libtpu: 0.0.40
codegen_flags: <defaults>
</compile_context>

<pallas_src>
import functools

import jax
import jax.numpy as jnp
from jax import lax
from jax.experimental import pallas as pl
from jax.experimental.pallas import tpu as pltpu

_EPS_COSINE = 1e-8


def _round_up(x: int, m: int) -> int:
    return ((x + m - 1) // m) * m


# ---------------------------------------------------------------------------
# Kernel 1: full-catalog logits  (session_embs @ item_embs.T), cosine fused.
# ---------------------------------------------------------------------------
def _full_catalog_kernel(sess_ref, item_ref, out_ref, *, cosine, eps):
    s = sess_ref[...]
    it = item_ref[...]
    if cosine:
        # Normalize per-tile in f32 (rsqrt -> EUP slot, hidden under the MXU).
        # max(||x||, eps) == sqrt(max(||x||^2, eps^2)), so rsqrt of the clamped
        # squared norm matches the PyTorch eps semantics exactly.
        s32 = s.astype(jnp.float32)
        i32 = it.astype(jnp.float32)
        s_inv = lax.rsqrt(jnp.maximum(jnp.sum(s32 * s32, axis=-1, keepdims=True), eps * eps))
        i_inv = lax.rsqrt(jnp.maximum(jnp.sum(i32 * i32, axis=-1, keepdims=True), eps * eps))
        s = (s32 * s_inv).astype(s.dtype)
        it = (i32 * i_inv).astype(it.dtype)
    # Transpose-free matmul: RHS contracted on its last dim, f32 accumulation,
    # operands kept in their native dtype.
    out_ref[...] = lax.dot_general(
        s, it,
        dimension_numbers=(((1,), (1,)), ((), ())),
        preferred_element_type=jnp.float32,
    ).astype(out_ref.dtype)


def _pick_mm_tiles(S, N, D, in_bytes, out_bytes, budget=12 * 1024 * 1024):
    # Resident session tile as large as practical (catalog streamed exactly
    # once when it covers the whole batch); on VMEM pressure shrink the
    # streamed item tile first, the resident session tile last.  Budget keeps
    # the double-buffered footprint under v5e's 16 MiB scoped VMEM default.
    ts = min(1024, _round_up(S, 8))
    tn = min(512, _round_up(N, 128))

    def footprint(ts_, tn_):
        return 2 * ((ts_ + tn_) * D * in_bytes + ts_ * tn_ * out_bytes)

    while footprint(ts, tn) > budget and tn > 128:
        tn = max(128, (tn // 2) // 128 * 128)
    while footprint(ts, tn) > budget and ts > 8:
        ts = max(8, (ts // 2) // 8 * 8)
    return ts, tn


def full_catalog_logits(session_embs, item_embs, *, cosine):
    S, D = session_embs.shape
    N, _ = item_embs.shape
    out_dtype = session_embs.dtype

    # Lane-dense D (zero columns change neither dot products nor norms).
    D_pad = _round_up(D, 128)
    if D_pad != D:
        session_embs = jnp.pad(session_embs, ((0, 0), (0, D_pad - D)))
        item_embs = jnp.pad(item_embs, ((0, 0), (0, D_pad - D)))

    in_bytes = session_embs.dtype.itemsize
    out_bytes = jnp.dtype(out_dtype).itemsize
    ts, tn = _pick_mm_tiles(S, N, D_pad, in_bytes, out_bytes)

    S_pad = _round_up(S, ts)
    N_pad = _round_up(N, tn)
    if S_pad != S:
        session_embs = jnp.pad(session_embs, ((0, S_pad - S), (0, 0)))
    if N_pad != N:
        item_embs = jnp.pad(item_embs, ((0, N_pad - N), (0, 0)))

    kernel = functools.partial(_full_catalog_kernel, cosine=cosine, eps=_EPS_COSINE)
    out = pl.pallas_call(
        kernel,
        out_shape=jax.ShapeDtypeStruct((S_pad, N_pad), out_dtype),
        grid_spec=pltpu.PrefetchScalarGridSpec(
            num_scalar_prefetch=0,
            # Items on the inner axis: the session tile stays resident while
            # the catalog streams through once per session tile.
            grid=(S_pad // ts, N_pad // tn),
            in_specs=[
                pl.BlockSpec((ts, D_pad), lambda i, j: (i, 0)),   # resident sessions
                pl.BlockSpec((tn, D_pad), lambda i, j: (j, 0)),   # streamed items
            ],
            out_specs=pl.BlockSpec((ts, tn), lambda i, j: (i, j)),
        ),
        compiler_params=pltpu.CompilerParams(
            dimension_semantics=("parallel", "parallel"),
        ),
    )(session_embs, item_embs)
    if S_pad != S or N_pad != N:
        out = out[:S, :N]
    return out


# ---------------------------------------------------------------------------
# Kernel 2: pos/neg logits via double-buffered in-kernel DMA gather.
#   logits[s, c] = <item_embs[ids[s, c]], session_embs[s]>
# Item table stays in HBM; candidate rows are DMA'd into a (2, C, ts, D) VMEM
# scratch (candidate-major so the output slab (C, ts) is lane-dense).  Cosine
# normalization is applied only to the session tile and the gathered rows.
# ---------------------------------------------------------------------------
def _pos_neg_kernel(ids_ref, sess_ref, item_hbm, out_ref, gath_ref, sem,
                    *, ts, C, cosine, eps):
    i = pl.program_id(0)
    n_steps = pl.num_programs(0)
    n_rows = ts * C

    def issue_gather(tile_idx, slot_idx):
        base = tile_idx * n_rows

        def per_session(t, carry):
            row_base = base + t * C
            for c in range(C):  # C is a static Python int -> fully unrolled issue
                row_id = ids_ref[row_base + c]
                pltpu.make_async_copy(
                    item_hbm.at[pl.ds(row_id, 1), :],
                    gath_ref.at[slot_idx, c, pl.ds(t, 1), :],
                    sem.at[slot_idx],
                ).start()
            return carry

        lax.fori_loop(0, ts, per_session, 0)

    slot = i % 2

    # Prime the pipeline on the first step.
    @pl.when(i == 0)
    def _():
        issue_gather(0, 0)

    # Prefetch the next tile's candidate rows into the other slot; overlaps
    # with this step's wait + reduce (ids for the whole batch are in SMEM).
    @pl.when(i + 1 < n_steps)
    def _():
        issue_gather(i + 1, 1 - slot)

    # Single aggregated wait: every row copy of this slot landed on sem[slot]
    # and together they cover exactly the (C, ts, D) slot slab (same bytes).
    pltpu.make_async_copy(gath_ref.at[slot], gath_ref.at[slot], sem.at[slot]).wait()

    g = gath_ref[slot].astype(jnp.float32)      # (C, ts, D)
    s = sess_ref[...].astype(jnp.float32)       # (ts, D)
    if cosine:
        g = g * lax.rsqrt(jnp.maximum(jnp.sum(g * g, axis=-1, keepdims=True), eps * eps))
        s = s * lax.rsqrt(jnp.maximum(jnp.sum(s * s, axis=-1, keepdims=True), eps * eps))
    out_ref[...] = jnp.sum(g * s[None, :, :], axis=-1).astype(out_ref.dtype)


def pos_neg_logits(session_embs, item_embs, candidate_item_ids, *, cosine):
    S, D = session_embs.shape
    N, _ = item_embs.shape
    _, C = candidate_item_ids.shape
    out_dtype = session_embs.dtype

    # Session tile: full (8-padded) batch when small, else 128 so the
    # transposed (C, ts) output slab is lane-dense.
    ts = _round_up(S, 8) if S <= 128 else 128
    S_pad = _round_up(S, ts)
    if S_pad != S:
        session_embs = jnp.pad(session_embs, ((0, S_pad - S), (0, 0)))
        # Padded ids default to item row 0 (valid for any N >= 1); the padded
        # sessions' logits are sliced off below.
        candidate_item_ids = jnp.pad(candidate_item_ids, ((0, S_pad - S), (0, 0)))

    ids_flat = candidate_item_ids.reshape(-1).astype(jnp.int32)
    # TODO(synk): for production S*C (e.g. 4096*256) move ids to a per-step
    # SMEM/VMEM BlockSpec and chunk C so the (2, C, ts, D) scratch and the
    # number of in-flight row DMAs stay bounded on v7x (64 MiB VMEM).

    kernel = functools.partial(_pos_neg_kernel, ts=ts, C=C,
                               cosine=cosine, eps=_EPS_COSINE)
    out_t = pl.pallas_call(
        kernel,
        out_shape=jax.ShapeDtypeStruct((C, S_pad), out_dtype),
        grid_spec=pltpu.PrefetchScalarGridSpec(
            num_scalar_prefetch=1,
            grid=(S_pad // ts,),
            in_specs=[
                pl.BlockSpec((ts, D), lambda i, ids: (i, 0)),
                pl.BlockSpec(memory_space=pl.ANY),    # item table stays in HBM
            ],
            out_specs=pl.BlockSpec((C, ts), lambda i, ids: (0, i)),
            scratch_shapes=[
                pltpu.VMEM((2, C, ts, D), item_embs.dtype),   # double-buffered gather
                pltpu.SemaphoreType.DMA((2,)),
            ],
        ),
        # "arbitrary": the cross-step gather prefetch carries state in scratch
        # (a 'parallel' axis would let v7x split work across its 2 TCs but is
        # incompatible with the cross-step double buffer).
        compiler_params=pltpu.CompilerParams(dimension_semantics=("arbitrary",)),
    )(ids_flat, session_embs, item_embs)
    return out_t.T[:S]


# ---------------------------------------------------------------------------
# Module wrapper (mirrors DistanceSimilarityModule.forward)
# ---------------------------------------------------------------------------
class DistanceSimilarityModule:
    dist_available = ("dot", "cosine")

    def __init__(self, distance: str = "dot"):
        if distance not in self.dist_available:
            raise ValueError("`dist` can only be either `dot` or `cosine`.")
        self.distance = distance

    def __call__(self, session_embs, item_embs, candidate_item_ids=None):
        cosine = self.distance == "cosine"
        if candidate_item_ids is None:
            return full_catalog_logits(session_embs, item_embs, cosine=cosine)
        return pos_neg_logits(
            session_embs, item_embs, candidate_item_ids, cosine=cosine
        )

    # TODO(synk): _recommend_u2i (TorchRanker top-k + csr filtering) is not part
    # of forward() and is not implemented here.


# ---------------------------------------------------------------------------
# Reference (plain JAX) for verification
# ---------------------------------------------------------------------------
def _ref_normalize(x, eps=_EPS_COSINE):
    norm = jnp.sqrt(jnp.sum(x * x, axis=-1, keepdims=True))
    return x / jnp.maximum(norm, eps)


def _ref_forward(session_embs, item_embs, candidate_item_ids, distance):
    if distance == "cosine":
        session_embs = _ref_normalize(session_embs)
        item_embs = _ref_normalize(item_embs)
    if candidate_item_ids is None:
        return session_embs @ item_embs.T
    cand = jnp.take(item_embs, candidate_item_ids, axis=0)       # (S, C, D)
    return jnp.einsum("scd,sd->sc", cand, session_embs)


if __name__ == "__main__":
    key = jax.random.PRNGKey(0)

    configs = [
        dict(S=16, D=128, N=256, C=8),     # aligned shapes
        dict(S=10, D=64, N=200, C=5),      # ragged shapes (exercise padding)
        dict(S=160, D=128, N=300, C=4),    # multi-step pos/neg grid (double buffer)
    ]

    ok = True
    for cfg in configs:
        S, D, N, C = cfg["S"], cfg["D"], cfg["N"], cfg["C"]
        k1, k2, k3, key = jax.random.split(key, 4)
        session_embs = jax.random.normal(k1, (S, D), dtype=jnp.float32)
        item_embs = jax.random.normal(k2, (N, D), dtype=jnp.float32)
        candidate_item_ids = jax.random.randint(k3, (S, C), 0, N, dtype=jnp.int32)

        for distance in ("dot", "cosine"):
            module = DistanceSimilarityModule(distance=distance)

            # Full-catalog branch
            logits_full = module(session_embs, item_embs)
            jax.block_until_ready(logits_full)
            ref_full = _ref_forward(session_embs, item_embs, None, distance)
            ok &= bool(jnp.allclose(logits_full, ref_full, atol=1e-4, rtol=1e-4))

            # Pos/neg (candidate) branch
            logits_pn = module(session_embs, item_embs, candidate_item_ids)
            jax.block_until_ready(logits_pn)
            ref_pn = _ref_forward(session_embs, item_embs, candidate_item_ids, distance)
            ok &= bool(jnp.allclose(logits_pn, ref_pn, atol=1e-4, rtol=1e-4))

    assert ok, "Pallas kernel output mismatch vs reference"
    print("KERNEL_OK")
</pallas_src>

<mosaic_0001>
module attributes {stable_mosaic.version = 11 : i64} {
  func.func @_full_catalog_kernel(%arg0: i32, %arg1: i32, %arg2: memref<16x128xf32, #tpu.memory_space<vmem>>, %arg3: memref<256x128xf32, #tpu.memory_space<vmem>>, %arg4: memref<16x256xf32, #tpu.memory_space<vmem>>) attributes {dimension_semantics = [#tpu.dimension_semantics<parallel>, #tpu.dimension_semantics<parallel>], iteration_bounds = array<i64: 1, 1>, scalar_prefetch = 0 : i64, scratch_operands = 0 : i64, tpu.core_type = #tpu.core_type<tc>, window_params = [{transform_indices = @transform_0, window_bounds = array<i64: 16, 128>}, {transform_indices = @transform_1, window_bounds = array<i64: 256, 128>}, {transform_indices = @transform_2, window_bounds = array<i64: 16, 256>}]} {
    %c0 = arith.constant 0 : index
    %c0_0 = arith.constant 0 : index
    %0 = vector.load %arg2[%c0, %c0_0] : memref<16x128xf32, #tpu.memory_space<vmem>>, vector<16x128xf32>
    %c0_1 = arith.constant 0 : index
    %c0_2 = arith.constant 0 : index
    %1 = vector.load %arg3[%c0_1, %c0_2] : memref<256x128xf32, #tpu.memory_space<vmem>>, vector<256x128xf32>
    %cst = arith.constant dense<0.000000e+00> : vector<16x256xf32>
    %2 = tpu.matmul %0, %1, %cst {dimension_numbers = #tpu.dot_dimension_numbers<[1], [1], [0], [0], [0, 0, 1, 0], [], []>} : vector<16x128xf32>, vector<256x128xf32>, vector<16x256xf32> -> vector<16x256xf32>
    %c0_3 = arith.constant 0 : index
    %c0_4 = arith.constant 0 : index
    %3 = vector.load %arg4[%c0_3, %c0_4] : memref<16x256xf32, #tpu.memory_space<vmem>>, vector<16x256xf32>
    tpu.vector_store %arg4[%c0_3, %c0_4], %2 {strides = array<i32>} : memref<16x256xf32, #tpu.memory_space<vmem>>, vector<16x256xf32>,
    return
  }
  func.func @transform_0(%arg0: i32, %arg1: i32) -> (i32, i32) {
    %c0_i32 = arith.constant 0 : i32
    %c0_i32_0 = arith.constant 0 : i32
    return %arg0, %c0_i32 : i32, i32
  }
  func.func @transform_1(%arg0: i32, %arg1: i32) -> (i32, i32) {
    %c0_i32 = arith.constant 0 : i32
    %c0_i32_0 = arith.constant 0 : i32
    return %arg1, %c0_i32 : i32, i32
  }
  func.func @transform_2(%arg0: i32, %arg1: i32) -> (i32, i32) {
    %c0_i32 = arith.constant 0 : i32
    return %arg0, %arg1 : i32, i32
  }
}

</mosaic_0001>

<bundles_post_ra>
// kernel: tpu_custom_call.1
= control target key start
LH: loop header
LB: loop body
LE: loop exit
PB: predicated region body
PF: predicated region fallthrough
CT: control target
= control target key end

     0   :  { %7 = vsyncpa [#allocation3], 0  ;;  %s394_s0 = inlined_call_operand.hbm [shape: f32[16,128], index: 0, kind: input, shape index: {}]   ;;  %s395_s1 = inlined_call_operand.hbm [shape: f32[256,128], index: 1, kind: input, shape index: {}]   ;;  %s396_s2 = inlined_call_operand.hbm [shape: f32[16,256], index: 2, kind: output, shape index: {}]  }
   0x1   :  { %8 = vsyncpa [#allocation6], 0 }
   0x2   :  { %9 = vsyncpa [#allocation4], 0  ;;  %s336_s9 = smov [#allocation2]   ;;  %s264_s13 = scalar_lea.hbm %s394_s0, 256 }
   0x3   :  { %s15_s10 = sshll.u32 %s336_s9, 4  ;;  %p265_p0 = scmp.ne.s32.totalorder %s394_s0, %s264_s13  ;;  %s16_s10 = int_to_ptr.vmem [resolvable:$true] %s15_s10 }
   0x4   :  { %p268_p1 = scmp.lt.u32.totalorder %s264_s13, %s394_s0 }
   0x6   :  { %p270_p2 = pnand %p268_p1, %p265_p0 }
   0x8   :  { %273 = shalt.err (!%p270_p2)
}
   0x9   :  { %s274_s18 = scalar_lea.vmem %s16_s10, 256  ;;  %p279_p4 = scmp.lt.s32.totalorder %s16_s10, %s16_s10 }
   0xa   :  { %p275_p3 = scmp.ne.s32.totalorder %s16_s10, %s274_s18  ;;  %p280_p5 = scmp.lt.s32.totalorder %s274_s18, %s274_s18 }
   0xc   :  { %p281_p6 = por %p280_p5, %p279_p4 }
   0xe   :  { %p282_p7 = pnand %p281_p6, %p275_p3 }
  0x10   :  { %285 = shalt.err (!%p282_p7)
}
  0x11   :  { %s337_s19 = smov 128   ;;  %s338_s20 = smov 8  }
  0x12   :  { %21 = dma.hbm_to_vmem [thread:$0]  %s394_s0, 256, %s16_s10, [#allocation3], %s337_s19, %s337_s19, %s338_s20  }
  0x13   :  { %s339_s23 = smov [#allocation5]   ;;  %s286_s27 = scalar_lea.hbm %s395_s1, 4096 }
  0x14   :  { %s27_s24 = sshll.u32 %s339_s23, 4  ;;  %p287_p8 = scmp.ne.s32.totalorder %s395_s1, %s286_s27  ;;  %s28_s24 = int_to_ptr.vmem [resolvable:$true] %s27_s24 }
  0x15   :  { %p290_p9 = scmp.lt.u32.totalorder %s286_s27, %s395_s1 }
  0x17   :  { %p292_p10 = pnand %p290_p9, %p287_p8 }
  0x19   :  { %295 = shalt.err (!%p292_p10)
}
  0x1a   :  { %s296_s4 = scalar_lea.vmem %s28_s24, 4096  ;;  %p301_p12 = scmp.lt.s32.totalorder %s28_s24, %s28_s24 }
  0x1b   :  { %p297_p11 = scmp.ne.s32.totalorder %s28_s24, %s296_s4  ;;  %p302_p13 = scmp.lt.s32.totalorder %s296_s4, %s296_s4 }
  0x1d   :  { %p303_p0 = por %p302_p13, %p301_p12 }
  0x1f   :  { %p304_p1 = pnand %p303_p0, %p297_p11 }
  0x21   :  { %307 = shalt.err (!%p304_p1)
}
  0x22   :  { %33 = dma.hbm_to_vmem [thread:$0]  %s395_s1, 4096, %s28_s24, [#allocation6], %s337_s19, %s337_s19, %s338_s20  }
  0x23   :  { %330 = dma.done.wait [#allocation3], 256  }
  0x24   :  { %331 = vsyncadd [#allocation3], 4294967040 }
  0x25   :  { %332 = dma.done.wait [#allocation6], 4096  }
  0x26   :  { %333 = vsyncadd [#allocation6], 4294963200  ;;  %v58_v0 = vld [vmem:[#allocation5 + $0x80] sm:$0xff]  ;;  %v59_v1 = vld [vmem:[#allocation5 + $0x88] sm:$0xff]  ;;  %s340_s1 = smov [#allocation7]  }
  0x27   :  { %v42_v2 = vld [vmem:[#allocation5] sm:$0xff]  ;;  %v209_v3 = vpack.c.bf16 %v59_v1, %v58_v0  ;;  %v43_v4 = vld [vmem:[#allocation5 + $0x8] sm:$0xff]  ;;  %v60_v5 = vld [vmem:[#allocation5 + $0x90] sm:$0xff]  ;;  %s160_s6 = sshll.u32 %s340_s1, 4  ;;  %s161_s6 = int_to_ptr.vmem [resolvable:$true] %s160_s6 }
  0x28   :  { %v61_v6 = vld [vmem:[#allocation5 + $0x98] sm:$0xff]  ;;  %v211_v7 = vpack.c.bf16 %v43_v4, %v42_v2  ;;  %v44_v9 = vld [vmem:[#allocation5 + $0x10] sm:$0xff]  ;;  %v62_v11 = vld [vmem:[#allocation5 + $0xa0] sm:$0xff]  ;;  %s308_s7 = scalar_lea.vmem %s161_s6, 512  ;;  %p313_p3 = scmp.lt.s32.totalorder %s161_s6, %s161_s6 }
  0x29   :  { %v213_v8 = vpack.c.bf16 %v61_v6, %v60_v5  ;;  %210 = vmatprep.subr.bf16.mxu0 %v209_v3  ;;  %241 = vmatprep.subr.bf16.mxu1 %v209_v3  ;;  %v45_v10 = vld [vmem:[#allocation5 + $0x18] sm:$0xff]  ;;  %v63_v12 = vld [vmem:[#allocation5 + $0xa8] sm:$0xff]  ;;  %v40_v15 = vld [vmem:[#allocation2] sm:$0xff]  ;;  %p309_p2 = scmp.ne.s32.totalorder %s161_s6, %s308_s7  ;;  %p314_p4 = scmp.lt.s32.totalorder %s308_s7, %s308_s7 }
  0x2a   :  { %212 = vmatpush3.bf16.xpose.msra.mxu0 %v211_v7  ;;  %249 = vmatpush3.bf16.xpose.msra.mxu1 %v211_v7  ;;  %v215_v13 = vpack.c.bf16 %v45_v10, %v44_v9  ;;  %v217_v14 = vpack.c.bf16 %v63_v12, %v62_v11  ;;  %v41_v16 = vld [vmem:[#allocation2 + $0x8] sm:$0xff]  ;;  %v46_v17 = vld [vmem:[#allocation5 + $0x20] sm:$0xff]  ;;  %v47_v18 = vld [vmem:[#allocation5 + $0x28] sm:$0xff] }
  0x2b   :  { %214 = vmatprep.subr.bf16.mxu0 %v213_v8  ;;  %242 = vmatprep.subr.bf16.mxu1 %v213_v8  ;;  %v64_v19 = vld [vmem:[#allocation5 + $0xb0] sm:$0xff]  ;;  %v65_v20 = vld [vmem:[#allocation5 + $0xb8] sm:$0xff]  ;;  %v219_v21 = vpack.c.bf16 %v47_v18, %v46_v17  ;;  %v66_v25 = vld [vmem:[#allocation5 + $0xc0] sm:$0xff]  ;;  %p315_p5 = por %p314_p4, %p313_p3 }
  0x2c   :  { %205 = vmatprep.mubr.f32.mxu0 %v40_v15  ;;  %207 = vmatprep.mubr.f32.mxu1 %v41_v16  ;;  %v221_v22 = vpack.c.bf16 %v65_v20, %v64_v19  ;;  %v48_v23 = vld [vmem:[#allocation5 + $0x30] sm:$0xff]  ;;  %v49_v24 = vld [vmem:[#allocation5 + $0x38] sm:$0xff]  ;;  %v67_v26 = vld [vmem:[#allocation5 + $0xc8] sm:$0xff] }
  0x2d   :  { %v223_v27 = vpack.c.bf16 %v49_v24, %v48_v23  ;;  %v225_v28 = vpack.c.bf16 %v67_v26, %v66_v25  ;;  %v50_v29 = vld [vmem:[#allocation5 + $0x40] sm:$0xff]  ;;  %v51_v30 = vld [vmem:[#allocation5 + $0x48] sm:$0xff]  ;;  %v68_v31 = vld [vmem:[#allocation5 + $0xd0] sm:$0xff]  ;;  %p316_p6 = pnand %p315_p5, %p309_p2 }
  0x2e   :  { %v69_v32 = vld [vmem:[#allocation5 + $0xd8] sm:$0xff]  ;;  %v227_v33 = vpack.c.bf16 %v51_v30, %v50_v29  ;;  %v52_v35 = vld [vmem:[#allocation5 + $0x50] sm:$0xff]  ;;  %v70_v37 = vld [vmem:[#allocation5 + $0xe0] sm:$0xff] }
  0x2f   :  { %v229_v34 = vpack.c.bf16 %v69_v32, %v68_v31  ;;  %v53_v36 = vld [vmem:[#allocation5 + $0x58] sm:$0xff]  ;;  %v71_v38 = vld [vmem:[#allocation5 + $0xe8] sm:$0xff]  ;;  %v54_v41 = vld [vmem:[#allocation5 + $0x60] sm:$0xff] }
  0x30   :  { %v231_v39 = vpack.c.bf16 %v53_v36, %v52_v35  ;;  %v233_v40 = vpack.c.bf16 %v71_v38, %v70_v37  ;;  %v55_v42 = vld [vmem:[#allocation5 + $0x68] sm:$0xff]  ;;  %v72_v43 = vld [vmem:[#allocation5 + $0xf0] sm:$0xff]  ;;  %v73_v44 = vld [vmem:[#allocation5 + $0xf8] sm:$0xff] }
  0x31   :  { %v235_v45 = vpack.c.bf16 %v55_v42, %v54_v41  ;;  %v237_v46 = vpack.c.bf16 %v73_v44, %v72_v43  ;;  %v56_v47 = vld [vmem:[#allocation5 + $0x70] sm:$0xff]  ;;  %v57_v48 = vld [vmem:[#allocation5 + $0x78] sm:$0xff] }
  0x32   :  { %216 = vmatpush3.bf16.xpose.msra.mxu0 %v215_v13  ;;  %250 = vmatpush3.bf16.xpose.msra.mxu1 %v215_v13  ;;  %v239_v49 = vpack.c.bf16 %v57_v48, %v56_v47 }
  0x33   :  { %218 = vmatprep.subr.bf16.mxu0 %v217_v14  ;;  %243 = vmatprep.subr.bf16.mxu1 %v217_v14 }
  0x3a   :  { %220 = vmatpush3.bf16.xpose.msra.mxu0 %v219_v21  ;;  %251 = vmatpush3.bf16.xpose.msra.mxu1 %v219_v21 }
  0x3b   :  { %222 = vmatprep.subr.bf16.mxu0 %v221_v22  ;;  %244 = vmatprep.subr.bf16.mxu1 %v221_v22 }
  0x42   :  { %224 = vmatpush3.bf16.xpose.msra.mxu0 %v223_v27  ;;  %252 = vmatpush3.bf16.xpose.msra.mxu1 %v223_v27 }
  0x43   :  { %226 = vmatprep.subr.bf16.mxu0 %v225_v28  ;;  %245 = vmatprep.subr.bf16.mxu1 %v225_v28 }
  0x4a   :  { %228 = vmatpush3.bf16.xpose.msra.mxu0 %v227_v33  ;;  %253 = vmatpush3.bf16.xpose.msra.mxu1 %v227_v33 }
  0x4b   :  { %230 = vmatprep.subr.bf16.mxu0 %v229_v34  ;;  %246 = vmatprep.subr.bf16.mxu1 %v229_v34 }
  0x52   :  { %232 = vmatpush3.bf16.xpose.msra.mxu0 %v231_v39  ;;  %254 = vmatpush3.bf16.xpose.msra.mxu1 %v231_v39 }
  0x53   :  { %234 = vmatprep.subr.bf16.mxu0 %v233_v40  ;;  %247 = vmatprep.subr.bf16.mxu1 %v233_v40 }
  0x5a   :  { %236 = vmatpush3.bf16.xpose.msra.mxu0 %v235_v45  ;;  %255 = vmatpush3.bf16.xpose.msra.mxu1 %v235_v45 }
  0x5b   :  { %238 = vmatprep.subr.bf16.mxu0 %v237_v46  ;;  %248 = vmatprep.subr.bf16.mxu1 %v237_v46 }
  0x62   :  { %240 = vmatpush3.bf16.xpose.msra.mxu0 %v239_v49  ;;  %256 = vmatpush3.bf16.xpose.msra.mxu1 %v239_v49 }
  0x69   :  { %206 = vmatmul.mubr.f32.vlgmr.msra.gmra.mrb[0].mxu0 %v40_v15  ;;  %208 = vmatmul.mubr.f32.vlgmr.msra.gmra.mrb[0].mxu1 %v41_v16 }
 0x13c   :  { %v140_v50 = vpop.f32.mrb[0].mxu0  ;;  %v146_v51 = vpop.f32.mrb[0].mxu1 }
 0x13d   :  { %151 = vst [vmem:[#allocation7] sm:$0xff] %v140_v50  ;;  %153 = vst [vmem:[#allocation7 + $0x10] sm:$0xff] %v146_v51  ;;  %v142_v52 = vpop.f32.mrb[1].mxu0  ;;  %v148_v53 = vpop.f32.mrb[1].mxu1 }
 0x13e   :  { %152 = vst [vmem:[#allocation7 + $0x8] sm:$0xff] %v142_v52  ;;  %154 = vst [vmem:[#allocation7 + $0x18] sm:$0xff] %v148_v53 }
 0x13f   :  { %319 = shalt.err (!%p316_p6)
}
 0x140   :  { %s320_s10 = scalar_lea.hbm %s396_s2, 512 }
 0x141   :  { %p321_p7 = scmp.ne.s32.totalorder %s396_s2, %s320_s10  ;;  %p324_p8 = scmp.lt.u32.totalorder %s320_s10, %s396_s2 }
 0x143   :  { %p326_p9 = pnand %p324_p8, %p321_p7 }
 0x145   :  { %329 = shalt.err (!%p326_p9)
}
 0x146   :  { %s341_s15 = smov 256   ;;  %s342_s16 = smov 16  }
 0x147   :  { %166 = dma.vmem_to_hbm [thread:$0]  %s161_s6, 512, %s396_s2, [#allocation4], %s341_s15, %s341_s15, %s342_s16  }
 0x148   :  { %334 = dma.done.wait [#allocation4], 512  }
 0x149   :  { %335 = vsyncadd [#allocation4], 4294966784 }
 0x14a   :  { %170 = vsyncpa [#allocation3], 1 }
 0x14b   :  { %171 = vsyncpa [#allocation6], 1 }
 0x14c   :  { %172 = vsyncpa [#allocation4], 1 }

</bundles_post_ra>
